<compile_context>
chip_gen: v7x
topology: tpu7x:2x2x1
jax: 0.10.0
libtpu: 0.0.40
codegen_flags: <defaults>
</compile_context>

<pallas_src>
import functools
import math

import jax
import jax.numpy as jnp
from jax.experimental import pallas as pl
from jax.experimental.pallas import tpu as pltpu

_LANE = 128
_SUBLANE = 8


def _round_up(x, m):
    return ((x + m - 1) // m) * m


def _apply_activation(y, activation):
    """f32 epilogue (VPU compare/select, EUP transcendentals)."""
    if activation == "relu":
        return jnp.maximum(y, 0.0)
    if activation == "sigmoid":
        return jax.nn.sigmoid(y)
    if activation == "tanh":
        return jnp.tanh(y)
    if activation == "leakyrelu":
        return jnp.where(y >= 0.0, y, 0.01 * y)  # nn.LeakyReLU default slope
    if activation == "none":
        return y
    raise ValueError(f"unknown activation {activation}")


def _fused_dnn_kernel(*refs, n_layers, activation, compute_dtype):
    """Fused MLP: refs = (x, w0, b0, w1, b1, ..., o).

    x_ref : (tm, D0)              batch tile (true input width, no lane pad)
    wi_ref: (Ki_pad, Ni_pad)      full weight, VMEM-resident across grid steps
    bi_ref: (1, Ni_pad)           bias row (f32)
    o_ref : (tm, Dlast)           output tile (true output width)
    Intermediate activations stay in registers / VMEM temporaries.
    """
    x_ref = refs[0]
    o_ref = refs[1 + 2 * n_layers]

    h = x_ref[...].astype(jnp.float32)
    for i in range(n_layers):
        w_ref = refs[1 + 2 * i]
        b_ref = refs[2 + 2 * i]
        # MXU matmul: (optionally bf16) operands, f32 accumulate.
        y = jnp.dot(
            h.astype(compute_dtype),
            w_ref[...],
            preferred_element_type=jnp.float32,
        )
        # f32 epilogue fused right after the matmul (no VMEM round-trip).
        y = y + b_ref[...].astype(jnp.float32)
        h = _apply_activation(y, activation)

    # If the last layer was lane-padded, drop the padded columns in-register.
    o_ref[...] = h[:, : o_ref.shape[-1]].astype(o_ref.dtype)


def init_dnn_params(key, layers):
    """Deterministic parameter init mirroring Dnn._init_weights:
    kaiming_uniform_ on weights (fan_in mode, default leaky_relu gain ->
    bound = sqrt(6 / fan_in)), bias filled with 0.0.
    Returns unpadded (w (in,out), b (1,out)) pairs in f32."""
    params = []
    for i in range(len(layers) - 1):
        in_dim, out_dim = layers[i], layers[i + 1]
        key, sub = jax.random.split(key)
        bound = math.sqrt(6.0 / in_dim)
        w_pt = jax.random.uniform(
            sub, (out_dim, in_dim), dtype=jnp.float32, minval=-bound, maxval=bound
        )
        params.append((w_pt.T, jnp.zeros((1, out_dim), dtype=jnp.float32)))
    return params


def prepare_dnn_params(params, compute_dtype=jnp.bfloat16):
    """Zero-pad internal feature dims to 128-lane multiples ONCE and cast
    weights to the MXU feed dtype. The FIRST layer keeps its true K (so x needs
    no wrapper-side feature padding) and the LAST layer keeps its true output
    width (so the kernel writes (B, out_dim) directly). Zero padding keeps the
    math exact. Biases stay f32 for the f32 epilogue."""
    prepared = []
    n = len(params)
    for i, (w, b) in enumerate(params):
        din, dout = w.shape
        din_p = din if i == 0 else _round_up(din, _LANE)
        dout_p = dout if i == n - 1 else _round_up(dout, _LANE)
        w_p = (
            jnp.zeros((din_p, dout_p), dtype=compute_dtype)
            .at[:din, :dout]
            .set(w.astype(compute_dtype))
        )
        b_p = jnp.zeros((1, dout_p), dtype=jnp.float32).at[:, :dout].set(b)
        prepared.append((w_p, b_p))
    return prepared


def dnn_forward(x, prepared_params, activation="relu", block_batch=512):
    """Single fused pallas_call over the whole MLP.

    x               : (B, D0) f32, streamed unpadded along the batch axis
    prepared_params : output of prepare_dnn_params (lane-padded, cast)
    Returns (B, D_last) in x.dtype.
    """
    act = activation.lower()
    n_layers = len(prepared_params)
    B, din = x.shape
    assert din == prepared_params[0][0].shape[0], "input width mismatch"
    dout = prepared_params[-1][0].shape[1]
    compute_dtype = jnp.dtype(prepared_params[0][0].dtype)

    # Batch tile: sublane-aligned for the MXU feed dtype (x8 f32, x16 bf16),
    # capped at block_batch; ragged batches are handled by Pallas edge masking.
    pack = max(1, 4 // compute_dtype.itemsize)
    sublane = _SUBLANE * pack
    tm = min(block_batch, _round_up(B, sublane))
    # v7x: when the batch allows, cap tm so the grid has >=2 steps and the
    # "parallel" batch axis can be sharded across both TensorCores.
    if B >= 2 * sublane:
        tm = min(tm, _round_up(pl.cdiv(B, 2), sublane))
    grid = (pl.cdiv(B, tm),)

    # Advisory cost estimate (true FLOPs on padded widths, resident params
    # fetched once, batch streamed in/out once).
    flops = 2 * B * sum(w.shape[0] * w.shape[1] for w, _ in prepared_params)
    transcendentals = (
        B * sum(b.shape[1] for _, b in prepared_params)
        if act in ("sigmoid", "tanh")
        else 0
    )
    param_bytes = sum(
        w.size * w.dtype.itemsize + b.size * b.dtype.itemsize
        for w, b in prepared_params
    )
    io_bytes = (
        B * din * x.dtype.itemsize + B * dout * jnp.dtype(x.dtype).itemsize
    )
    cost = pl.CostEstimate(
        flops=flops, transcendentals=transcendentals,
        bytes_accessed=param_bytes + io_bytes,
    )

    def _run(single_buffer_params):
        # Explicit VMEM budget: resident params (+ single vs double buffer) +
        # double-buffered in/out batch tiles + f32 activation scratch, with
        # 2x headroom, clamped to [32 MiB, 64 MiB] (v7x-safe).
        param_bufs = 1 if single_buffer_params else 2
        max_width = max(max(w.shape) for w, _ in prepared_params)
        need = (
            param_bufs * param_bytes
            + 2 * tm * din * x.dtype.itemsize
            + 2 * tm * dout * jnp.dtype(x.dtype).itemsize
            + 4 * tm * max_width * 4
        )
        vmem_limit = int(min(max(2 * need + (4 << 20), 32 << 20), 64 << 20))

        param_kwargs = (
            dict(pipeline_mode=pl.Buffered(1)) if single_buffer_params else {}
        )
        in_specs = [pl.BlockSpec((tm, din), lambda i: (i, 0))]
        flat_inputs = [x]
        for (w, b) in prepared_params:
            # Constant index_map -> weight/bias blocks stay VMEM-resident
            # across all batch-grid steps (fetched once, single-buffered).
            in_specs.append(pl.BlockSpec(w.shape, lambda i: (0, 0), **param_kwargs))
            in_specs.append(pl.BlockSpec(b.shape, lambda i: (0, 0), **param_kwargs))
            flat_inputs.append(w)
            flat_inputs.append(b)

        kernel = functools.partial(
            _fused_dnn_kernel,
            n_layers=n_layers,
            activation=act,
            compute_dtype=compute_dtype,
        )

        return pl.pallas_call(
            kernel,
            out_shape=jax.ShapeDtypeStruct((B, dout), x.dtype),
            grid=grid,
            in_specs=in_specs,
            out_specs=pl.BlockSpec((tm, dout), lambda i: (i, 0)),
            compiler_params=pltpu.CompilerParams(
                dimension_semantics=("parallel",),
                vmem_limit_bytes=vmem_limit,
            ),
            cost_estimate=cost,
        )(*flat_inputs)

    try:
        return _run(single_buffer_params=True)
    except Exception:
        # Fallback if this JAX build rejects Buffered(1) on resident operands.
        return _run(single_buffer_params=False)


def dnn_forward_ref(x, params, activation="relu", compute_dtype=jnp.float32):
    """Plain-JAX reference (unpadded params) mirroring the kernel's dtype plan."""
    act = activation.lower()
    h = x.astype(jnp.float32)
    for (w, b) in params:
        y = jnp.dot(
            h.astype(compute_dtype),
            w.astype(compute_dtype),
            preferred_element_type=jnp.float32,
        )
        y = y + b.astype(jnp.float32)
        h = _apply_activation(y, act)
    return h


if __name__ == "__main__":
    key = jax.random.PRNGKey(0)

    # Dnn(layers=[32, 64, 32, 16], dropout_p=0.5, activation='relu'), eval mode.
    layers = [32, 64, 32, 16]
    batch = 8

    key, pkey, xkey = jax.random.split(key, 3)
    params = init_dnn_params(pkey, layers)
    x = jax.random.normal(xkey, (batch, layers[0]), dtype=jnp.float32)

    # 1) f32 weight feed: numerically matches the plain-JAX reference tightly.
    prep_f32 = prepare_dnn_params(params, compute_dtype=jnp.float32)
    out_f32 = jax.block_until_ready(dnn_forward(x, prep_f32, activation="relu"))
    ref_f32 = dnn_forward_ref(x, params, activation="relu", compute_dtype=jnp.float32)
    assert out_f32.shape == (batch, layers[-1])
    assert jnp.allclose(out_f32, ref_f32, atol=1e-5, rtol=1e-5)

    # 2) bf16 weight feed (MXU-optimal on v5e/v6e/v7x), f32 accumulate/epilogue.
    prep_bf16 = prepare_dnn_params(params, compute_dtype=jnp.bfloat16)
    out_bf16 = jax.block_until_ready(dnn_forward(x, prep_bf16, activation="relu"))
    ref_bf16 = dnn_forward_ref(x, params, activation="relu", compute_dtype=jnp.bfloat16)
    assert out_bf16.shape == (batch, layers[-1])
    assert jnp.allclose(out_bf16, ref_bf16, atol=1e-2, rtol=1e-2)

    # 3) Ragged multi-block batch: exercises >=2 grid steps ("parallel" axis,
    #    v7x 2-TC shardable) and the ragged-edge masking path (no batch pad).
    key, xkey2 = jax.random.split(key)
    x_big = jax.random.normal(xkey2, (200, layers[0]), dtype=jnp.float32)
    out_big = jax.block_until_ready(dnn_forward(x_big, prep_bf16, activation="relu"))
    ref_big = dnn_forward_ref(x_big, params, activation="relu",
                              compute_dtype=jnp.bfloat16)
    assert out_big.shape == (200, layers[-1])
    assert jnp.allclose(out_big, ref_big, atol=1e-2, rtol=1e-2)

    print("KERNEL_OK")
</pallas_src>

<mosaic_0001>
module attributes {stable_mosaic.version = 11 : i64} {
  func.func @_fused_dnn_kernel(%arg0: i32, %arg1: memref<8x32xf32, #tpu.memory_space<vmem>>, %arg2: memref<32x128xf32, #tpu.memory_space<vmem>>, %arg3: memref<1x128xf32, #tpu.memory_space<vmem>>, %arg4: memref<128x128xf32, #tpu.memory_space<vmem>>, %arg5: memref<1x128xf32, #tpu.memory_space<vmem>>, %arg6: memref<128x16xf32, #tpu.memory_space<vmem>>, %arg7: memref<1x16xf32, #tpu.memory_space<vmem>>, %arg8: memref<8x16xf32, #tpu.memory_space<vmem>>) attributes {dimension_semantics = [#tpu.dimension_semantics<parallel>], iteration_bounds = array<i64: 1>, scalar_prefetch = 0 : i64, scratch_operands = 0 : i64, tpu.core_type = #tpu.core_type<tc>, window_params = [{transform_indices = @transform_0, window_bounds = array<i64: 8, 32>}, {pipeline_mode = #tpu.pipeline_mode<synchronous>, transform_indices = @transform_1, window_bounds = array<i64: 32, 128>}, {pipeline_mode = #tpu.pipeline_mode<synchronous>, transform_indices = @transform_2, window_bounds = array<i64: 1, 128>}, {pipeline_mode = #tpu.pipeline_mode<synchronous>, transform_indices = @transform_3, window_bounds = array<i64: 128, 128>}, {pipeline_mode = #tpu.pipeline_mode<synchronous>, transform_indices = @transform_4, window_bounds = array<i64: 1, 128>}, {pipeline_mode = #tpu.pipeline_mode<synchronous>, transform_indices = @transform_5, window_bounds = array<i64: 128, 16>}, {pipeline_mode = #tpu.pipeline_mode<synchronous>, transform_indices = @transform_6, window_bounds = array<i64: 1, 16>}, {transform_indices = @transform_7, window_bounds = array<i64: 8, 16>}]} {
    %c0 = arith.constant 0 : index
    %c0_0 = arith.constant 0 : index
    %0 = vector.load %arg1[%c0, %c0_0] : memref<8x32xf32, #tpu.memory_space<vmem>>, vector<8x32xf32>
    %c0_1 = arith.constant 0 : index
    %c0_2 = arith.constant 0 : index
    %1 = vector.load %arg2[%c0_1, %c0_2] : memref<32x128xf32, #tpu.memory_space<vmem>>, vector<32x128xf32>
    %cst = arith.constant dense<0.000000e+00> : vector<8x128xf32>
    %2 = tpu.matmul %0, %1, %cst {dimension_numbers = #tpu.dot_dimension_numbers<[1], [0], [0], [1], [0, 0, 1, 1], [], []>} : vector<8x32xf32>, vector<32x128xf32>, vector<8x128xf32> -> vector<8x128xf32>
    %c0_3 = arith.constant 0 : index
    %c0_4 = arith.constant 0 : index
    %3 = vector.load %arg3[%c0_3, %c0_4] : memref<1x128xf32, #tpu.memory_space<vmem>>, vector<1x128xf32>
    %4 = vector.broadcast %3 : vector<1x128xf32> to vector<8x128xf32>
    %5 = arith.addf %2, %4 : vector<8x128xf32>
    %cst_5 = arith.constant 0.000000e+00 : f32
    %6 = vector.broadcast %cst_5 : f32 to vector<8x128xf32>
    %7 = arith.maximumf %5, %6 : vector<8x128xf32>
    %c0_6 = arith.constant 0 : index
    %c0_7 = arith.constant 0 : index
    %8 = vector.load %arg4[%c0_6, %c0_7] : memref<128x128xf32, #tpu.memory_space<vmem>>, vector<128x128xf32>
    %cst_8 = arith.constant dense<0.000000e+00> : vector<8x128xf32>
    %9 = tpu.matmul %7, %8, %cst_8 {dimension_numbers = #tpu.dot_dimension_numbers<[1], [0], [0], [1], [0, 0, 1, 1], [], []>} : vector<8x128xf32>, vector<128x128xf32>, vector<8x128xf32> -> vector<8x128xf32>
    %c0_9 = arith.constant 0 : index
    %c0_10 = arith.constant 0 : index
    %10 = vector.load %arg5[%c0_9, %c0_10] : memref<1x128xf32, #tpu.memory_space<vmem>>, vector<1x128xf32>
    %11 = vector.broadcast %10 : vector<1x128xf32> to vector<8x128xf32>
    %12 = arith.addf %9, %11 : vector<8x128xf32>
    %cst_11 = arith.constant 0.000000e+00 : f32
    %13 = vector.broadcast %cst_11 : f32 to vector<8x128xf32>
    %14 = arith.maximumf %12, %13 : vector<8x128xf32>
    %c0_12 = arith.constant 0 : index
    %c0_13 = arith.constant 0 : index
    %15 = vector.load %arg6[%c0_12, %c0_13] : memref<128x16xf32, #tpu.memory_space<vmem>>, vector<128x16xf32>
    %cst_14 = arith.constant dense<0.000000e+00> : vector<8x16xf32>
    %16 = tpu.matmul %14, %15, %cst_14 {dimension_numbers = #tpu.dot_dimension_numbers<[1], [0], [0], [1], [0, 0, 1, 1], [], []>} : vector<8x128xf32>, vector<128x16xf32>, vector<8x16xf32> -> vector<8x16xf32>
    %c0_15 = arith.constant 0 : index
    %c0_16 = arith.constant 0 : index
    %17 = vector.load %arg7[%c0_15, %c0_16] : memref<1x16xf32, #tpu.memory_space<vmem>>, vector<1x16xf32>
    %18 = vector.broadcast %17 : vector<1x16xf32> to vector<8x16xf32>
    %19 = arith.addf %16, %18 : vector<8x16xf32>
    %cst_17 = arith.constant 0.000000e+00 : f32
    %20 = vector.broadcast %cst_17 : f32 to vector<8x16xf32>
    %21 = arith.maximumf %19, %20 : vector<8x16xf32>
    %c0_18 = arith.constant 0 : index
    %c0_19 = arith.constant 0 : index
    %22 = vector.load %arg8[%c0_18, %c0_19] : memref<8x16xf32, #tpu.memory_space<vmem>>, vector<8x16xf32>
    tpu.vector_store %arg8[%c0_18, %c0_19], %21 {strides = array<i32>} : memref<8x16xf32, #tpu.memory_space<vmem>>, vector<8x16xf32>,
    return
  }
  func.func @transform_0(%arg0: i32) -> (i32, i32) {
    %c0_i32 = arith.constant 0 : i32
    %c0_i32_0 = arith.constant 0 : i32
    return %arg0, %c0_i32 : i32, i32
  }
  func.func @transform_1(%arg0: i32) -> (i32, i32) {
    %c0_i32 = arith.constant 0 : i32
    %c0_i32_0 = arith.constant 0 : i32
    %c0_i32_1 = arith.constant 0 : i32
    return %c0_i32, %c0_i32_0 : i32, i32
  }
  func.func @transform_2(%arg0: i32) -> (i32, i32) {
    %c0_i32 = arith.constant 0 : i32
    %c0_i32_0 = arith.constant 0 : i32
    %c0_i32_1 = arith.constant 0 : i32
    return %c0_i32, %c0_i32_0 : i32, i32
  }
  func.func @transform_3(%arg0: i32) -> (i32, i32) {
    %c0_i32 = arith.constant 0 : i32
    %c0_i32_0 = arith.constant 0 : i32
    %c0_i32_1 = arith.constant 0 : i32
    return %c0_i32, %c0_i32_0 : i32, i32
  }
  func.func @transform_4(%arg0: i32) -> (i32, i32) {
    %c0_i32 = arith.constant 0 : i32
    %c0_i32_0 = arith.constant 0 : i32
    %c0_i32_1 = arith.constant 0 : i32
    return %c0_i32, %c0_i32_0 : i32, i32
  }
  func.func @transform_5(%arg0: i32) -> (i32, i32) {
    %c0_i32 = arith.constant 0 : i32
    %c0_i32_0 = arith.constant 0 : i32
    %c0_i32_1 = arith.constant 0 : i32
    return %c0_i32, %c0_i32_0 : i32, i32
  }
  func.func @transform_6(%arg0: i32) -> (i32, i32) {
    %c0_i32 = arith.constant 0 : i32
    %c0_i32_0 = arith.constant 0 : i32
    %c0_i32_1 = arith.constant 0 : i32
    return %c0_i32, %c0_i32_0 : i32, i32
  }
  func.func @transform_7(%arg0: i32) -> (i32, i32) {
    %c0_i32 = arith.constant 0 : i32
    %c0_i32_0 = arith.constant 0 : i32
    return %arg0, %c0_i32 : i32, i32
  }
}

module attributes {stable_mosaic.version = 11 : i64} {
  func.func @_fused_dnn_kernel(%arg0: i32, %arg1: memref<8x32xf32, #tpu.memory_space<vmem>>, %arg2: memref<32x128xf32, #tpu.memory_space<vmem>>, %arg3: memref<1x128xf32, #tpu.memory_space<vmem>>, %arg4: memref<128x128xf32, #tpu.memory_space<vmem>>, %arg5: memref<1x128xf32, #tpu.memory_space<vmem>>, %arg6: memref<128x16xf32, #tpu.memory_space<vmem>>, %arg7: memref<1x16xf32, #tpu.memory_space<vmem>>, %arg8: memref<8x16xf32, #tpu.memory_space<vmem>>) attributes {dimension_semantics = [#tpu.dimension_semantics<parallel>], iteration_bounds = array<i64: 1>, scalar_prefetch = 0 : i64, scratch_operands = 0 : i64, tpu.core_type = #tpu.core_type<tc>, window_params = [{transform_indices = @transform_0, window_bounds = array<i64: 8, 32>}, {pipeline_mode = #tpu.pipeline_mode<synchronous>, transform_indices = @transform_1, window_bounds = array<i64: 32, 128>}, {pipeline_mode = #tpu.pipeline_mode<synchronous>, transform_indices = @transform_2, window_bounds = array<i64: 1, 128>}, {pipeline_mode = #tpu.pipeline_mode<synchronous>, transform_indices = @transform_3, window_bounds = array<i64: 128, 128>}, {pipeline_mode = #tpu.pipeline_mode<synchronous>, transform_indices = @transform_4, window_bounds = array<i64: 1, 128>}, {pipeline_mode = #tpu.pipeline_mode<synchronous>, transform_indices = @transform_5, window_bounds = array<i64: 128, 16>}, {pipeline_mode = #tpu.pipeline_mode<synchronous>, transform_indices = @transform_6, window_bounds = array<i64: 1, 16>}, {transform_indices = @transform_7, window_bounds = array<i64: 8, 16>}]} {
    %c0 = arith.constant 0 : index
    %c0_0 = arith.constant 0 : index
    %0 = vector.load %arg1[%c0, %c0_0] : memref<8x32xf32, #tpu.memory_space<vmem>>, vector<8x32xf32>
    %c0_1 = arith.constant 0 : index
    %c0_2 = arith.constant 0 : index
    %1 = vector.load %arg2[%c0_1, %c0_2] : memref<32x128xf32, #tpu.memory_space<vmem>>, vector<32x128xf32>
    %cst = arith.constant dense<0.000000e+00> : vector<8x128xf32>
    %2 = tpu.matmul %0, %1, %cst {dimension_numbers = #tpu.dot_dimension_numbers<[1], [0], [0], [1], [0, 0, 1, 1], [], []>} : vector<8x32xf32>, vector<32x128xf32>, vector<8x128xf32> -> vector<8x128xf32>
    %c0_3 = arith.constant 0 : index
    %c0_4 = arith.constant 0 : index
    %3 = vector.load %arg3[%c0_3, %c0_4] : memref<1x128xf32, #tpu.memory_space<vmem>>, vector<1x128xf32>
    %4 = vector.broadcast %3 : vector<1x128xf32> to vector<8x128xf32>
    %5 = arith.addf %2, %4 : vector<8x128xf32>
    %cst_5 = arith.constant 0.000000e+00 : f32
    %6 = vector.broadcast %cst_5 : f32 to vector<8x128xf32>
    %7 = arith.maximumf %5, %6 : vector<8x128xf32>
    %c0_6 = arith.constant 0 : index
    %c0_7 = arith.constant 0 : index
    %8 = vector.load %arg4[%c0_6, %c0_7] : memref<128x128xf32, #tpu.memory_space<vmem>>, vector<128x128xf32>
    %cst_8 = arith.constant dense<0.000000e+00> : vector<8x128xf32>
    %9 = tpu.matmul %7, %8, %cst_8 {dimension_numbers = #tpu.dot_dimension_numbers<[1], [0], [0], [1], [0, 0, 1, 1], [], []>} : vector<8x128xf32>, vector<128x128xf32>, vector<8x128xf32> -> vector<8x128xf32>
    %c0_9 = arith.constant 0 : index
    %c0_10 = arith.constant 0 : index
    %10 = vector.load %arg5[%c0_9, %c0_10] : memref<1x128xf32, #tpu.memory_space<vmem>>, vector<1x128xf32>
    %11 = vector.broadcast %10 : vector<1x128xf32> to vector<8x128xf32>
    %12 = arith.addf %9, %11 : vector<8x128xf32>
    %cst_11 = arith.constant 0.000000e+00 : f32
    %13 = vector.broadcast %cst_11 : f32 to vector<8x128xf32>
    %14 = arith.maximumf %12, %13 : vector<8x128xf32>
    %c0_12 = arith.constant 0 : index
    %c0_13 = arith.constant 0 : index
    %15 = vector.load %arg6[%c0_12, %c0_13] : memref<128x16xf32, #tpu.memory_space<vmem>>, vector<128x16xf32>
    %cst_14 = arith.constant dense<0.000000e+00> : vector<8x16xf32>
    %16 = tpu.matmul %14, %15, %cst_14 {dimension_numbers = #tpu.dot_dimension_numbers<[1], [0], [0], [1], [0, 0, 1, 1], [], []>} : vector<8x128xf32>, vector<128x16xf32>, vector<8x16xf32> -> vector<8x16xf32>
    %c0_15 = arith.constant 0 : index
    %c0_16 = arith.constant 0 : index
    %17 = vector.load %arg7[%c0_15, %c0_16] : memref<1x16xf32, #tpu.memory_space<vmem>>, vector<1x16xf32>
    %18 = vector.broadcast %17 : vector<1x16xf32> to vector<8x16xf32>
    %19 = arith.addf %16, %18 : vector<8x16xf32>
    %cst_17 = arith.constant 0.000000e+00 : f32
    %20 = vector.broadcast %cst_17 : f32 to vector<8x16xf32>
    %21 = arith.maximumf %19, %20 : vector<8x16xf32>
    %c0_18 = arith.constant 0 : index
    %c0_19 = arith.constant 0 : index
    %22 = vector.load %arg8[%c0_18, %c0_19] : memref<8x16xf32, #tpu.memory_space<vmem>>, vector<8x16xf32>
    tpu.vector_store %arg8[%c0_18, %c0_19], %21 {strides = array<i32>} : memref<8x16xf32, #tpu.memory_space<vmem>>, vector<8x16xf32>,
    return
  }
  func.func @transform_0(%arg0: i32) -> (i32, i32) {
    %c0_i32 = arith.constant 0 : i32
    %c0_i32_0 = arith.constant 0 : i32
    return %arg0, %c0_i32 : i32, i32
  }
  func.func @transform_1(%arg0: i32) -> (i32, i32) {
    %c0_i32 = arith.constant 0 : i32
    %c0_i32_0 = arith.constant 0 : i32
    %c0_i32_1 = arith.constant 0 : i32
    return %c0_i32, %c0_i32_0 : i32, i32
  }
  func.func @transform_2(%arg0: i32) -> (i32, i32) {
    %c0_i32 = arith.constant 0 : i32
    %c0_i32_0 = arith.constant 0 : i32
    %c0_i32_1 = arith.constant 0 : i32
    return %c0_i32, %c0_i32_0 : i32, i32
  }
  func.func @transform_3(%arg0: i32) -> (i32, i32) {
    %c0_i32 = arith.constant 0 : i32
    %c0_i32_0 = arith.constant 0 : i32
    %c0_i32_1 = arith.constant 0 : i32
    return %c0_i32, %c0_i32_0 : i32, i32
  }
  func.func @transform_4(%arg0: i32) -> (i32, i32) {
    %c0_i32 = arith.constant 0 : i32
    %c0_i32_0 = arith.constant 0 : i32
    %c0_i32_1 = arith.constant 0 : i32
    return %c0_i32, %c0_i32_0 : i32, i32
  }
  func.func @transform_5(%arg0: i32) -> (i32, i32) {
    %c0_i32 = arith.constant 0 : i32
    %c0_i32_0 = arith.constant 0 : i32
    %c0_i32_1 = arith.constant 0 : i32
    return %c0_i32, %c0_i32_0 : i32, i32
  }
  func.func @transform_6(%arg0: i32) -> (i32, i32) {
    %c0_i32 = arith.constant 0 : i32
    %c0_i32_0 = arith.constant 0 : i32
    %c0_i32_1 = arith.constant 0 : i32
    return %c0_i32, %c0_i32_0 : i32, i32
  }
  func.func @transform_7(%arg0: i32) -> (i32, i32) {
    %c0_i32 = arith.constant 0 : i32
    %c0_i32_0 = arith.constant 0 : i32
    return %arg0, %c0_i32 : i32, i32
  }
}

</mosaic_0001>

<bundles_post_ra>
// kernel: tpu_custom_call.1
= control target key start
LH: loop header
LB: loop body
LE: loop exit
PB: predicated region body
PF: predicated region fallthrough
CT: control target
= control target key end

     0   :  { %12 = vsyncpa [#allocation3], 0  ;;  %s766_s0 = inlined_call_operand.vmem [shape: f32[8,32], index: 0, kind: input, shape index: {}]   ;;  %s767_s1 = inlined_call_operand.hbm [shape: f32[32,128], index: 1, kind: input, shape index: {}]   ;;  %s768_s2 = inlined_call_operand.vmem [shape: f32[1,128], index: 2, kind: input, shape index: {}]   ;;  %s769_s3 = inlined_call_operand.vmem [shape: f32[128,128], index: 3, kind: input, shape index: {}]   ;;  %s770_s4 = inlined_call_operand.vmem [shape: f32[1,128], index: 4, kind: input, shape index: {}]   ;;  %s771_s5 = inlined_call_operand.vmem [shape: f32[128,16], index: 5, kind: input, shape index: {}]   ;;  %s772_s6 = inlined_call_operand.vmem [shape: f32[1,16], index: 6, kind: input, shape index: {}]   ;;  %s773_s7 = inlined_call_operand.hbm [shape: f32[8,16], index: 7, kind: output, shape index: {}]  }
   0x1   :  { %13 = vsyncpa [#allocation4], 0  ;;  %s566_s24 = smov [#allocation2]   ;;  %s518_s28 = scalar_lea.hbm %s767_s1, 512 }
   0x2   :  { %s21_s25 = sshll.u32 %s566_s24, 4  ;;  %p519_p0 = scmp.ne.s32.totalorder %s767_s1, %s518_s28  ;;  %s22_s25 = int_to_ptr.vmem [resolvable:$true] %s21_s25 }
   0x3   :  { %p522_p1 = scmp.lt.u32.totalorder %s518_s28, %s767_s1 }
   0x5   :  { %p524_p2 = pnand %p522_p1, %p519_p0 }
   0x7   :  { %527 = shalt.err (!%p524_p2)
}
   0x8   :  { %s528_s10 = scalar_lea.vmem %s22_s25, 512  ;;  %p533_p4 = scmp.lt.s32.totalorder %s22_s25, %s22_s25 }
   0x9   :  { %p529_p3 = scmp.ne.s32.totalorder %s22_s25, %s528_s10  ;;  %p534_p5 = scmp.lt.s32.totalorder %s528_s10, %s528_s10 }
   0xb   :  { %p535_p6 = por %p534_p5, %p533_p4 }
   0xd   :  { %p536_p7 = pnand %p535_p6, %p529_p3 }
   0xf   :  { %539 = shalt.err (!%p536_p7)
}
  0x10   :  { %s567_s11 = smov 128   ;;  %s568_s12 = smov 8  }
  0x11   :  { %27 = dma.hbm_to_vmem [thread:$0]  %s767_s1, 512, %s22_s25, [#allocation3], %s567_s11, %s567_s11, %s568_s12  }
  0x12   :  { %562 = dma.done.wait [#allocation3], 512  }
  0x13   :  { %563 = vsyncadd [#allocation3], 4294966784  ;;  %v569_v0 = vmov 0.0|0.0   ;;  %vm570_vm0 = vmmov 0   ;;  %v571_v1 = vmov 0.0   ;;  %v42_v2 = vld [vmem:[#allocation2] sm:$0xff] }
  0x14   :  { %457 = vmatprep.subr.bf16.mxu0 %v569_v0  ;;  %384 = vmatprep.mubr.msk.f32.mxu0 %vm570_vm0, %v571_v1  ;;  %v43_v3 = vld [vmem:[#allocation2 + $0x8] sm:$0xff]  ;;  %v44_v4 = vld [vmem:[#allocation2 + $0x10] sm:$0xff]  ;;  %v45_v6 = vld [vmem:[#allocation2 + $0x18] sm:$0xff]  ;;  %vm53_vm1 = vcmask 261120   ;;  %s572_s9 = smov [#allocation5]   ;;  %vm316_vm2 = vcmask 130048  }
  0x15   :  { %463 = vmatprep.subr.bf16.mxu1 %v569_v0  ;;  %419 = vmatprep.mubr.msk.f32.mxu1 %vm570_vm0, %v571_v1  ;;  %v458_v5 = vpack.c.bf16 %v43_v3, %v42_v2  ;;  %v128_v7 = vld [vmem:[%s769_s3] sm:$0xff]  ;;  %v129_v8 = vld [vmem:[%s769_s3 + $0x8] sm:$0xff]  ;;  %v130_v9 = vld [vmem:[%s769_s3 + $0x10] sm:$0xff]  ;;  %v461_v11 = vpack.c.bf16 %v45_v6, %v44_v4  ;;  %s324_s10 = sshll.u32 %s572_s9, 4  ;;  %s325_s10 = int_to_ptr.vmem [resolvable:$true] %s324_s10 }
  0x16   :  { %v131_v10 = vld [vmem:[%s769_s3 + $0x18] sm:$0xff]  ;;  %v464_v12 = vpack.c.bf16 %v129_v8, %v128_v7  ;;  %v132_v14 = vld [vmem:[%s769_s3 + $0x20] sm:$0xff]  ;;  %v133_v15 = vld [vmem:[%s769_s3 + $0x28] sm:$0xff]  ;;  %p545_p9 = scmp.lt.s32.totalorder %s325_s10, %s325_s10 }
  0x17   :  { %459 = vmatpush3.bf16.msra.mxu0 %v458_v5  ;;  %v467_v13 = vpack.c.bf16 %v131_v10, %v130_v9  ;;  %v41_v16 = vld [vmem:[%s766_s0] sm:$0xff]  ;;  %v470_v17 = vpack.c.bf16 %v133_v15, %v132_v14  ;;  %v134_v18 = vld [vmem:[%s769_s3 + $0x30] sm:$0xff]  ;;  %v135_v19 = vld [vmem:[%s769_s3 + $0x38] sm:$0xff] }
  0x18   :  { %460 = vmatprep.subr.bf16.mxu0 %v569_v0  ;;  %465 = vmatpush3.bf16.msra.mxu1 %v464_v12  ;;  %v473_v20 = vpack.c.bf16 %v135_v19, %v134_v18  ;;  %v136_v21 = vld [vmem:[%s769_s3 + $0x40] sm:$0xff]  ;;  %v137_v22 = vld [vmem:[%s769_s3 + $0x48] sm:$0xff]  ;;  %v138_v24 = vld [vmem:[%s769_s3 + $0x50] sm:$0xff] }
  0x19   :  { %466 = vmatprep.subr.bf16.mxu1 %v569_v0  ;;  %v476_v23 = vpack.c.bf16 %v137_v22, %v136_v21  ;;  %v139_v25 = vld [vmem:[%s769_s3 + $0x58] sm:$0xff]  ;;  %v140_v27 = vld [vmem:[%s769_s3 + $0x60] sm:$0xff]  ;;  %v141_v28 = vld [vmem:[%s769_s3 + $0x68] sm:$0xff] }
  0x1a   :  { %v479_v26 = vpack.c.bf16 %v139_v25, %v138_v24  ;;  %v482_v29 = vpack.c.bf16 %v141_v28, %v140_v27  ;;  %v142_v30 = vld [vmem:[%s769_s3 + $0x70] sm:$0xff]  ;;  %v143_v31 = vld [vmem:[%s769_s3 + $0x78] sm:$0xff]  ;;  %v222_v33 = vld [vmem:[%s771_s5] sm:$0xff] }
  0x1b   :  { %462 = vmatpush3.bf16.msra.mxu0 %v461_v11  ;;  %v485_v32 = vpack.c.bf16 %v143_v31, %v142_v30  ;;  %v223_v34 = vld [vmem:[%s771_s5 + $0x8] sm:$0xff]  ;;  %v224_v35 = vld [vmem:[%s771_s5 + $0x10] sm:$0xff]  ;;  %v225_v37 = vld [vmem:[%s771_s5 + $0x18] sm:$0xff] }
  0x1c   :  { %487 = vmatprep.subr.bf16.mxu0 %v569_v0  ;;  %468 = vmatpush3.bf16.msra.mxu1 %v467_v13  ;;  %v488_v36 = vpack.c.bf16 %v223_v34, %v222_v33  ;;  %v491_v38 = vpack.c.bf16 %v225_v37, %v224_v35  ;;  %v226_v39 = vld [vmem:[%s771_s5 + $0x20] sm:$0xff]  ;;  %v227_v40 = vld [vmem:[%s771_s5 + $0x28] sm:$0xff]  ;;  %v228_v42 = vld [vmem:[%s771_s5 + $0x30] sm:$0xff] }
  0x1d   :  { %469 = vmatprep.subr.bf16.mxu1 %v569_v0  ;;  %v494_v41 = vpack.c.bf16 %v227_v40, %v226_v39  ;;  %v229_v43 = vld [vmem:[%s771_s5 + $0x38] sm:$0xff]  ;;  %v230_v45 = vld [vmem:[%s771_s5 + $0x40] sm:$0xff]  ;;  %v231_v46 = vld [vmem:[%s771_s5 + $0x48] sm:$0xff] }
  0x1e   :  { %385 = vmatmul.mubr.msk.f32.vlgmr.msra.gmra.mrb[0].mxu0 %vm53_vm1, %v41_v16  ;;  %v497_v44 = vpack.c.bf16 %v229_v43, %v228_v42  ;;  %v500_v47 = vpack.c.bf16 %v231_v46, %v230_v45  ;;  %v232_v48 = vld [vmem:[%s771_s5 + $0x50] sm:$0xff]  ;;  %v233_v49 = vld [vmem:[%s771_s5 + $0x58] sm:$0xff]  ;;  %v234_v51 = vld [vmem:[%s771_s5 + $0x60] sm:$0xff] }
  0x1f   :  { %454 = vmatprep.mubr.msk.f32.mxu0 %vm570_vm0, %v571_v1  ;;  %489 = vmatpush3.bf16.msra.mxu0 %v488_v36  ;;  %v503_v50 = vpack.c.bf16 %v233_v49, %v232_v48  ;;  %v235_v52 = vld [vmem:[%s771_s5 + $0x68] sm:$0xff]  ;;  %v333_v54 = vld [vmem:[%s768_s2] ss:$0 sm:$0xff]  ;;  %v236_v59 = vld [vmem:[%s771_s5 + $0x70] sm:$0xff] }
  0x20   :  { %471 = vmatpush3.bf16.msra.mxu1 %v470_v17  ;;  %490 = vmatprep.subr.bf16.mxu0 %v569_v0  ;;  %v506_v53 = vpack.c.bf16 %v235_v52, %v234_v51  ;;  %v237_v60 = vld [vmem:[%s771_s5 + $0x78] sm:$0xff]  ;;  %v335_v62 = vld [vmem:[%s770_s4] ss:$0 sm:$0xff]  ;;  %s540_s5 = scalar_lea.vmem %s325_s10, 128 }
  0x21   :  { %472 = vmatprep.subr.bf16.mxu1 %v569_v0  ;;  %v509_v61 = vpack.c.bf16 %v237_v60, %v236_v59  ;;  %v336_v3 = vld [vmem:[%s772_s6] ss:$0 sm:$0xff]  ;;  %p541_p8 = scmp.ne.s32.totalorder %s325_s10, %s540_s5  ;;  %p546_p10 = scmp.lt.s32.totalorder %s540_s5, %s540_s5 }
  0x23   :  { %492 = vmatpush3.bf16.msra.mxu0 %v491_v38  ;;  %p547_p11 = por %p546_p10, %p545_p9 }
  0x24   :  { %474 = vmatpush3.bf16.msra.mxu1 %v473_v20  ;;  %493 = vmatprep.subr.bf16.mxu0 %v569_v0 }
  0x25   :  { %475 = vmatprep.subr.bf16.mxu1 %v569_v0  ;;  %p548_p12 = pnand %p547_p11, %p541_p8 }
  0x27   :  { %495 = vmatpush3.bf16.msra.mxu0 %v494_v41 }
  0x28   :  { %477 = vmatpush3.bf16.msra.mxu1 %v476_v23  ;;  %496 = vmatprep.subr.bf16.mxu0 %v569_v0 }
  0x29   :  { %478 = vmatprep.subr.bf16.mxu1 %v569_v0 }
  0x2b   :  { %498 = vmatpush3.bf16.msra.mxu0 %v497_v44 }
  0x2c   :  { %480 = vmatpush3.bf16.msra.mxu1 %v479_v26  ;;  %499 = vmatprep.subr.bf16.mxu0 %v569_v0 }
  0x2d   :  { %481 = vmatprep.subr.bf16.mxu1 %v569_v0 }
  0x2f   :  { %501 = vmatpush3.bf16.msra.mxu0 %v500_v47 }
  0x30   :  { %483 = vmatpush3.bf16.msra.mxu1 %v482_v29  ;;  %502 = vmatprep.subr.bf16.mxu0 %v569_v0 }
  0x31   :  { %484 = vmatprep.subr.bf16.mxu1 %v569_v0 }
  0x33   :  { %504 = vmatpush3.bf16.msra.mxu0 %v503_v50 }
  0x34   :  { %486 = vmatpush3.bf16.msra.mxu1 %v485_v32  ;;  %505 = vmatprep.subr.bf16.mxu0 %v569_v0 }
  0x37   :  { %507 = vmatpush3.bf16.msra.mxu0 %v506_v53 }
  0x38   :  { %508 = vmatprep.subr.bf16.mxu0 %v569_v0 }
  0x3b   :  { %510 = vmatpush3.bf16.msra.mxu0 %v509_v61 }
  0xf1   :  { %v123_v55 = vpop.f32.mrb[0].mxu0 }
  0xf2   :  { %v124_v56 = vadd.f32 %v333_v54, %v123_v55  ;;  %v386_v57 = vpop.f32.mrb[1].mxu0 }
  0xf4   :  { %v127_v58 = vmax.f32 %v124_v56, 0.0 }
  0xf6   :  { %420 = vmatmul.mubr.f32.vlgmr.msra.gmra.mrb[0].mxu1 %v127_v58 }
 0x1c9   :  { %v217_v63 = vpop.f32.mrb[0].mxu1 }
 0x1ca   :  { %v218_v0 = vadd.f32 %v335_v62, %v217_v63  ;;  %v421_v1 = vpop.f32.mrb[1].mxu1 }
 0x1cc   :  { %v221_v2 = vmax.f32 %v218_v0, 0.0 }
 0x1ce   :  { %455 = vmatmul.mubr.f32.vlgmr.msra.gmra.mrb[2].mxu0 %v221_v2 }
 0x2a1   :  { %v311_v4 = vpop.f32.mrb[2].mxu0 }
 0x2a2   :  { %v312_v5 = vadd.f32 %v336_v3, %v311_v4  ;;  %v456_v6 = vpop.f32.mrb[3].mxu0 }
 0x2a4   :  { %v315_v7 = vmax.f32 %v312_v5, 0.0 }
 0x2a6   :  { %317 = vst.msk [vmem:[#allocation5] sm:$0xff] %vm316_vm2, %v315_v7 }
 0x2a7   :  { %551 = shalt.err (!%p548_p12)
}
 0x2a8   :  { %s552_s6 = scalar_lea.hbm %s773_s7, 128 }
 0x2a9   :  { %p553_p13 = scmp.ne.s32.totalorder %s773_s7, %s552_s6  ;;  %p556_p0 = scmp.lt.u32.totalorder %s552_s6, %s773_s7 }
 0x2ab   :  { %p558_p1 = pnand %p556_p0, %p553_p13 }
 0x2ad   :  { %561 = shalt.err (!%p558_p1)
}
 0x2ae   :  { %327 = dma.vmem_to_hbm [thread:$0]  %s325_s10, 128, %s773_s7, [#allocation4]  }
 0x2af   :  { %564 = dma.done.wait [#allocation4], 128  }
 0x2b0   :  { %565 = vsyncadd [#allocation4], 4294967168 }
 0x2b1   :  { %331 = vsyncpa [#allocation3], 1 }
 0x2b2   :  { %332 = vsyncpa [#allocation4], 1 }

// kernel: tpu_custom_call.1
= control target key start
LH: loop header
LB: loop body
LE: loop exit
PB: predicated region body
PF: predicated region fallthrough
CT: control target
= control target key end

     0   :  { %12 = vsyncpa [#allocation3], 0  ;;  %s766_s0 = inlined_call_operand.vmem [shape: f32[8,32], index: 0, kind: input, shape index: {}]   ;;  %s767_s1 = inlined_call_operand.hbm [shape: f32[32,128], index: 1, kind: input, shape index: {}]   ;;  %s768_s2 = inlined_call_operand.vmem [shape: f32[1,128], index: 2, kind: input, shape index: {}]   ;;  %s769_s3 = inlined_call_operand.vmem [shape: f32[128,128], index: 3, kind: input, shape index: {}]   ;;  %s770_s4 = inlined_call_operand.vmem [shape: f32[1,128], index: 4, kind: input, shape index: {}]   ;;  %s771_s5 = inlined_call_operand.vmem [shape: f32[128,16], index: 5, kind: input, shape index: {}]   ;;  %s772_s6 = inlined_call_operand.vmem [shape: f32[1,16], index: 6, kind: input, shape index: {}]   ;;  %s773_s7 = inlined_call_operand.hbm [shape: f32[8,16], index: 7, kind: output, shape index: {}]  }
   0x1   :  { %13 = vsyncpa [#allocation4], 0  ;;  %s566_s24 = smov [#allocation2]   ;;  %s518_s28 = scalar_lea.hbm %s767_s1, 512 }
   0x2   :  { %s21_s25 = sshll.u32 %s566_s24, 4  ;;  %p519_p0 = scmp.ne.s32.totalorder %s767_s1, %s518_s28  ;;  %s22_s25 = int_to_ptr.vmem [resolvable:$true] %s21_s25 }
   0x3   :  { %p522_p1 = scmp.lt.u32.totalorder %s518_s28, %s767_s1 }
   0x5   :  { %p524_p2 = pnand %p522_p1, %p519_p0 }
   0x7   :  { %527 = shalt.err (!%p524_p2)
}
   0x8   :  { %s528_s10 = scalar_lea.vmem %s22_s25, 512  ;;  %p533_p4 = scmp.lt.s32.totalorder %s22_s25, %s22_s25 }
   0x9   :  { %p529_p3 = scmp.ne.s32.totalorder %s22_s25, %s528_s10  ;;  %p534_p5 = scmp.lt.s32.totalorder %s528_s10, %s528_s10 }
   0xb   :  { %p535_p6 = por %p534_p5, %p533_p4 }
   0xd   :  { %p536_p7 = pnand %p535_p6, %p529_p3 }
   0xf   :  { %539 = shalt.err (!%p536_p7)
}
  0x10   :  { %s567_s11 = smov 128   ;;  %s568_s12 = smov 8  }
  0x11   :  { %27 = dma.hbm_to_vmem [thread:$0]  %s767_s1, 512, %s22_s25, [#allocation3], %s567_s11, %s567_s11, %s568_s12  }
  0x12   :  { %562 = dma.done.wait [#allocation3], 512  }
  0x13   :  { %563 = vsyncadd [#allocation3], 4294966784  ;;  %v569_v0 = vmov 0.0|0.0   ;;  %vm570_vm0 = vmmov 0   ;;  %v571_v1 = vmov 0.0   ;;  %v42_v2 = vld [vmem:[#allocation2] sm:$0xff] }
  0x14   :  { %457 = vmatprep.subr.bf16.mxu0 %v569_v0  ;;  %384 = vmatprep.mubr.msk.f32.mxu0 %vm570_vm0, %v571_v1  ;;  %v43_v3 = vld [vmem:[#allocation2 + $0x8] sm:$0xff]  ;;  %v44_v4 = vld [vmem:[#allocation2 + $0x10] sm:$0xff]  ;;  %v45_v6 = vld [vmem:[#allocation2 + $0x18] sm:$0xff]  ;;  %vm53_vm1 = vcmask 261120   ;;  %s572_s9 = smov [#allocation5]   ;;  %vm316_vm2 = vcmask 130048  }
  0x15   :  { %463 = vmatprep.subr.bf16.mxu1 %v569_v0  ;;  %419 = vmatprep.mubr.msk.f32.mxu1 %vm570_vm0, %v571_v1  ;;  %v458_v5 = vpack.c.bf16 %v43_v3, %v42_v2  ;;  %v128_v7 = vld [vmem:[%s769_s3] sm:$0xff]  ;;  %v129_v8 = vld [vmem:[%s769_s3 + $0x8] sm:$0xff]  ;;  %v130_v9 = vld [vmem:[%s769_s3 + $0x10] sm:$0xff]  ;;  %v461_v11 = vpack.c.bf16 %v45_v6, %v44_v4  ;;  %s324_s10 = sshll.u32 %s572_s9, 4  ;;  %s325_s10 = int_to_ptr.vmem [resolvable:$true] %s324_s10 }
  0x16   :  { %v131_v10 = vld [vmem:[%s769_s3 + $0x18] sm:$0xff]  ;;  %v464_v12 = vpack.c.bf16 %v129_v8, %v128_v7  ;;  %v132_v14 = vld [vmem:[%s769_s3 + $0x20] sm:$0xff]  ;;  %v133_v15 = vld [vmem:[%s769_s3 + $0x28] sm:$0xff]  ;;  %p545_p9 = scmp.lt.s32.totalorder %s325_s10, %s325_s10 }
  0x17   :  { %459 = vmatpush3.bf16.msra.mxu0 %v458_v5  ;;  %v467_v13 = vpack.c.bf16 %v131_v10, %v130_v9  ;;  %v41_v16 = vld [vmem:[%s766_s0] sm:$0xff]  ;;  %v470_v17 = vpack.c.bf16 %v133_v15, %v132_v14  ;;  %v134_v18 = vld [vmem:[%s769_s3 + $0x30] sm:$0xff]  ;;  %v135_v19 = vld [vmem:[%s769_s3 + $0x38] sm:$0xff] }
  0x18   :  { %460 = vmatprep.subr.bf16.mxu0 %v569_v0  ;;  %465 = vmatpush3.bf16.msra.mxu1 %v464_v12  ;;  %v473_v20 = vpack.c.bf16 %v135_v19, %v134_v18  ;;  %v136_v21 = vld [vmem:[%s769_s3 + $0x40] sm:$0xff]  ;;  %v137_v22 = vld [vmem:[%s769_s3 + $0x48] sm:$0xff]  ;;  %v138_v24 = vld [vmem:[%s769_s3 + $0x50] sm:$0xff] }
  0x19   :  { %466 = vmatprep.subr.bf16.mxu1 %v569_v0  ;;  %v476_v23 = vpack.c.bf16 %v137_v22, %v136_v21  ;;  %v139_v25 = vld [vmem:[%s769_s3 + $0x58] sm:$0xff]  ;;  %v140_v27 = vld [vmem:[%s769_s3 + $0x60] sm:$0xff]  ;;  %v141_v28 = vld [vmem:[%s769_s3 + $0x68] sm:$0xff] }
  0x1a   :  { %v479_v26 = vpack.c.bf16 %v139_v25, %v138_v24  ;;  %v482_v29 = vpack.c.bf16 %v141_v28, %v140_v27  ;;  %v142_v30 = vld [vmem:[%s769_s3 + $0x70] sm:$0xff]  ;;  %v143_v31 = vld [vmem:[%s769_s3 + $0x78] sm:$0xff]  ;;  %v222_v33 = vld [vmem:[%s771_s5] sm:$0xff] }
  0x1b   :  { %462 = vmatpush3.bf16.msra.mxu0 %v461_v11  ;;  %v485_v32 = vpack.c.bf16 %v143_v31, %v142_v30  ;;  %v223_v34 = vld [vmem:[%s771_s5 + $0x8] sm:$0xff]  ;;  %v224_v35 = vld [vmem:[%s771_s5 + $0x10] sm:$0xff]  ;;  %v225_v37 = vld [vmem:[%s771_s5 + $0x18] sm:$0xff] }
  0x1c   :  { %487 = vmatprep.subr.bf16.mxu0 %v569_v0  ;;  %468 = vmatpush3.bf16.msra.mxu1 %v467_v13  ;;  %v488_v36 = vpack.c.bf16 %v223_v34, %v222_v33  ;;  %v491_v38 = vpack.c.bf16 %v225_v37, %v224_v35  ;;  %v226_v39 = vld [vmem:[%s771_s5 + $0x20] sm:$0xff]  ;;  %v227_v40 = vld [vmem:[%s771_s5 + $0x28] sm:$0xff]  ;;  %v228_v42 = vld [vmem:[%s771_s5 + $0x30] sm:$0xff] }
  0x1d   :  { %469 = vmatprep.subr.bf16.mxu1 %v569_v0  ;;  %v494_v41 = vpack.c.bf16 %v227_v40, %v226_v39  ;;  %v229_v43 = vld [vmem:[%s771_s5 + $0x38] sm:$0xff]  ;;  %v230_v45 = vld [vmem:[%s771_s5 + $0x40] sm:$0xff]  ;;  %v231_v46 = vld [vmem:[%s771_s5 + $0x48] sm:$0xff] }
  0x1e   :  { %385 = vmatmul.mubr.msk.f32.vlgmr.msra.gmra.mrb[0].mxu0 %vm53_vm1, %v41_v16  ;;  %v497_v44 = vpack.c.bf16 %v229_v43, %v228_v42  ;;  %v500_v47 = vpack.c.bf16 %v231_v46, %v230_v45  ;;  %v232_v48 = vld [vmem:[%s771_s5 + $0x50] sm:$0xff]  ;;  %v233_v49 = vld [vmem:[%s771_s5 + $0x58] sm:$0xff]  ;;  %v234_v51 = vld [vmem:[%s771_s5 + $0x60] sm:$0xff] }
  0x1f   :  { %454 = vmatprep.mubr.msk.f32.mxu0 %vm570_vm0, %v571_v1  ;;  %489 = vmatpush3.bf16.msra.mxu0 %v488_v36  ;;  %v503_v50 = vpack.c.bf16 %v233_v49, %v232_v48  ;;  %v235_v52 = vld [vmem:[%s771_s5 + $0x68] sm:$0xff]  ;;  %v333_v54 = vld [vmem:[%s768_s2] ss:$0 sm:$0xff]  ;;  %v236_v59 = vld [vmem:[%s771_s5 + $0x70] sm:$0xff] }
  0x20   :  { %471 = vmatpush3.bf16.msra.mxu1 %v470_v17  ;;  %490 = vmatprep.subr.bf16.mxu0 %v569_v0  ;;  %v506_v53 = vpack.c.bf16 %v235_v52, %v234_v51  ;;  %v237_v60 = vld [vmem:[%s771_s5 + $0x78] sm:$0xff]  ;;  %v335_v62 = vld [vmem:[%s770_s4] ss:$0 sm:$0xff]  ;;  %s540_s5 = scalar_lea.vmem %s325_s10, 128 }
  0x21   :  { %472 = vmatprep.subr.bf16.mxu1 %v569_v0  ;;  %v509_v61 = vpack.c.bf16 %v237_v60, %v236_v59  ;;  %v336_v3 = vld [vmem:[%s772_s6] ss:$0 sm:$0xff]  ;;  %p541_p8 = scmp.ne.s32.totalorder %s325_s10, %s540_s5  ;;  %p546_p10 = scmp.lt.s32.totalorder %s540_s5, %s540_s5 }
  0x23   :  { %492 = vmatpush3.bf16.msra.mxu0 %v491_v38  ;;  %p547_p11 = por %p546_p10, %p545_p9 }
  0x24   :  { %474 = vmatpush3.bf16.msra.mxu1 %v473_v20  ;;  %493 = vmatprep.subr.bf16.mxu0 %v569_v0 }
  0x25   :  { %475 = vmatprep.subr.bf16.mxu1 %v569_v0  ;;  %p548_p12 = pnand %p547_p11, %p541_p8 }
  0x27   :  { %495 = vmatpush3.bf16.msra.mxu0 %v494_v41 }
  0x28   :  { %477 = vmatpush3.bf16.msra.mxu1 %v476_v23  ;;  %496 = vmatprep.subr.bf16.mxu0 %v569_v0 }
  0x29   :  { %478 = vmatprep.subr.bf16.mxu1 %v569_v0 }
  0x2b   :  { %498 = vmatpush3.bf16.msra.mxu0 %v497_v44 }
  0x2c   :  { %480 = vmatpush3.bf16.msra.mxu1 %v479_v26  ;;  %499 = vmatprep.subr.bf16.mxu0 %v569_v0 }
  0x2d   :  { %481 = vmatprep.subr.bf16.mxu1 %v569_v0 }
  0x2f   :  { %501 = vmatpush3.bf16.msra.mxu0 %v500_v47 }
  0x30   :  { %483 = vmatpush3.bf16.msra.mxu1 %v482_v29  ;;  %502 = vmatprep.subr.bf16.mxu0 %v569_v0 }
  0x31   :  { %484 = vmatprep.subr.bf16.mxu1 %v569_v0 }
  0x33   :  { %504 = vmatpush3.bf16.msra.mxu0 %v503_v50 }
  0x34   :  { %486 = vmatpush3.bf16.msra.mxu1 %v485_v32  ;;  %505 = vmatprep.subr.bf16.mxu0 %v569_v0 }
  0x37   :  { %507 = vmatpush3.bf16.msra.mxu0 %v506_v53 }
  0x38   :  { %508 = vmatprep.subr.bf16.mxu0 %v569_v0 }
  0x3b   :  { %510 = vmatpush3.bf16.msra.mxu0 %v509_v61 }
  0xf1   :  { %v123_v55 = vpop.f32.mrb[0].mxu0 }
  0xf2   :  { %v124_v56 = vadd.f32 %v333_v54, %v123_v55  ;;  %v386_v57 = vpop.f32.mrb[1].mxu0 }
  0xf4   :  { %v127_v58 = vmax.f32 %v124_v56, 0.0 }
  0xf6   :  { %420 = vmatmul.mubr.f32.vlgmr.msra.gmra.mrb[0].mxu1 %v127_v58 }
 0x1c9   :  { %v217_v63 = vpop.f32.mrb[0].mxu1 }
 0x1ca   :  { %v218_v0 = vadd.f32 %v335_v62, %v217_v63  ;;  %v421_v1 = vpop.f32.mrb[1].mxu1 }
 0x1cc   :  { %v221_v2 = vmax.f32 %v218_v0, 0.0 }
 0x1ce   :  { %455 = vmatmul.mubr.f32.vlgmr.msra.gmra.mrb[2].mxu0 %v221_v2 }
 0x2a1   :  { %v311_v4 = vpop.f32.mrb[2].mxu0 }
 0x2a2   :  { %v312_v5 = vadd.f32 %v336_v3, %v311_v4  ;;  %v456_v6 = vpop.f32.mrb[3].mxu0 }
 0x2a4   :  { %v315_v7 = vmax.f32 %v312_v5, 0.0 }
 0x2a6   :  { %317 = vst.msk [vmem:[#allocation5] sm:$0xff] %vm316_vm2, %v315_v7 }
 0x2a7   :  { %551 = shalt.err (!%p548_p12)
}
 0x2a8   :  { %s552_s6 = scalar_lea.hbm %s773_s7, 128 }
 0x2a9   :  { %p553_p13 = scmp.ne.s32.totalorder %s773_s7, %s552_s6  ;;  %p556_p0 = scmp.lt.u32.totalorder %s552_s6, %s773_s7 }
 0x2ab   :  { %p558_p1 = pnand %p556_p0, %p553_p13 }
 0x2ad   :  { %561 = shalt.err (!%p558_p1)
}
 0x2ae   :  { %327 = dma.vmem_to_hbm [thread:$0]  %s325_s10, 128, %s773_s7, [#allocation4]  }
 0x2af   :  { %564 = dma.done.wait [#allocation4], 128  }
 0x2b0   :  { %565 = vsyncadd [#allocation4], 4294967168 }
 0x2b1   :  { %331 = vsyncpa [#allocation3], 1 }
 0x2b2   :  { %332 = vsyncpa [#allocation4], 1 }

</bundles_post_ra>
